<compile_context>
chip_gen: v5e
topology: v5e:2x2
jax: 0.10.0
libtpu: 0.0.40
codegen_flags: <defaults>
</compile_context>

<pallas_src>
import jax
import jax.numpy as jnp
from jax import lax
from jax.experimental import pallas as pl
from jax.experimental.pallas import tpu as pltpu

EPS = 1e-5  # PyTorch nn.LayerNorm default eps


def _fs(shape):
    """Full-array BlockSpec for a grid=(1,) pallas_call."""
    n = len(shape)
    return pl.BlockSpec(shape, lambda i, _n=n: (0,) * _n)


def _ln(x, g, beta):
    mu = jnp.mean(x, axis=-1, keepdims=True)
    var = jnp.mean((x - mu) ** 2, axis=-1, keepdims=True)
    return (x - mu) * lax.rsqrt(var + EPS) * g + beta


# ---------------------------------------------------------------------------
# The single fused kernel
# ---------------------------------------------------------------------------
def _make_fused_kernel(n_others, B, Sq, E, query_pos, mm_dtype):
    n_mod = n_others + 1

    def kernel(xq_ref, xo_ref, wq_ref, wop_ref, wat_ref, w1_ref, w2_ref,
               vecs_ref, b1_ref, behq_ref, pack_ref):

        def vrow(k):                       # (1, E) row of the packed f32 vector slab
            return vecs_ref[pl.ds(k, 1), :]

        def mm(x, w):                      # MXU matmul, f32 accumulation
            return jnp.dot(x, w, preferred_element_type=jnp.float32)

        # 1) modality projections: Linear + LayerNorm + ReLU (dropout = identity)
        beh = mm(xq_ref[...], wq_ref[...])                                   # (B*Sq, E)
        beh = jnp.maximum(_ln(beh + vrow(0), vrow(1), vrow(2)), 0.0)

        others, others_c = [], []
        for i in range(n_others):
            y = mm(xo_ref[i], wop_ref[i])                                    # (B, E)
            y = jnp.maximum(
                _ln(y + vrow(3 + 3 * i), vrow(4 + 3 * i), vrow(5 + 3 * i)), 0.0)
            others.append(y)                          # f32, stored to output
            others_c.append(y.astype(mm_dtype))       # single cast, reused twice

        base = 3 + 3 * n_others
        bo_sum, qn_g, qn_beta = vrow(base), vrow(base + 1), vrow(base + 2)
        f_b2, f_g, f_beta = vrow(base + 3), vrow(base + 4), vrow(base + 5)

        # 2) cross attention with Skv == 1 (exact): softmax over one key is 1, so the
        #    per-head context == v and layer output == other @ (Wv @ Wo) + bo, identical
        #    for every query position.  Wv@Wo pre-folded; bo pre-summed across modalities.
        ctx = jnp.zeros((B, E), jnp.float32)
        for i in range(n_others):
            ctx = ctx + mm(others_c[i], wat_ref[i])
        ctx = ctx + bo_sum                                                   # (B, E)

        # 3) residual (broadcast over Sq) + query_feat_norm, kept 2-D on (B*Sq, E)
        ctx_b = jnp.broadcast_to(ctx[:, None, :], (B, Sq, E)).reshape(B * Sq, E)
        enhanced = _ln(beh + ctx_b, qn_g, qn_beta)                           # (B*Sq, E)
        behq_ref[...] = enhanced

        # 4) final fusion MLP: Linear -> ReLU -> Linear -> LayerNorm.
        #    Concat avoided: W1 consumed as per-modality (E, 2E) row blocks.
        beh_mean = jnp.mean(enhanced.reshape(B, Sq, E), axis=1)              # (B, E)
        parts = []
        oi = 0
        for j in range(n_mod):
            if j == query_pos:
                parts.append(beh_mean.astype(mm_dtype))
            else:
                parts.append(others_c[oi])
                oi += 1
        h = b1_ref[...]                                                      # (1, 2E)
        for j, part in enumerate(parts):
            h = h + mm(part, w1_ref[j])
        h = jnp.maximum(h, 0.0)
        fused = _ln(mm(h.astype(mm_dtype), w2_ref[...]) + f_b2, f_g, f_beta)  # (B, E)

        # 5) lane-packed small outputs: [ fused | projected_other_0 | projected_other_1 .. ]
        pack_ref[:, pl.ds(0, E)] = fused
        for i in range(n_others):
            pack_ref[:, pl.ds((1 + i) * E, E)] = others[i]

    return kernel


# ---------------------------------------------------------------------------
# Forward pass (mirrors CrossAttentionFusion.forward, eval mode)
# ---------------------------------------------------------------------------
def cross_attention_fusion_forward(params, inputs, embed_dim, num_heads, query_name,
                                   use_bf16=True):
    # num_heads is validated but unused in the fused path: for Skv == 1 the per-head
    # softmax is identically 1 and the head split/concat is the identity, so the collapse
    # is exact for any head count.
    if embed_dim % num_heads != 0:
        raise ValueError("embed_dim must be divisible by num_heads")
    E = embed_dim
    mm_dtype = jnp.bfloat16 if use_bf16 else jnp.float32   # f32 path = numerics debug mode

    modality_order = [n for n in inputs if n in params['proj']]
    if query_name not in modality_order or len(modality_order) < 2:
        # TODO(synk): missing-query / single-modality / empty-input fallbacks of the
        # original forward are not implemented in the fused kernel.
        raise NotImplementedError("fused kernel expects the query modality plus >=1 other")
    other_names = [n for n in modality_order if n != query_name]
    query_pos = modality_order.index(query_name)
    n_others = len(other_names)
    n_mod = len(modality_order)

    q_feats = inputs[query_name]
    assert q_feats.ndim == 3, "query modality must be (B, Sq, D)"
    B, Sq, Dq = q_feats.shape
    for n in other_names:
        assert inputs[n].ndim == 2, "non-query modalities must be (B, D)  (Skv == 1)"
    assert params['final']['w1'].shape[0] == n_mod * E, \
        "dynamic_fusion_mlps path not supported"

    Dp = max(inputs[n].shape[1] for n in other_names)

    def padcols(a):
        return jnp.pad(a, ((0, 0), (0, Dp - a.shape[1])))

    def padrows(a):
        return jnp.pad(a, ((0, Dp - a.shape[0]), (0, 0)))

    # --- packed activations / weights (matmul operands in mm_dtype) ---------------------
    xq = q_feats.reshape(B * Sq, Dq).astype(mm_dtype)
    xo = jnp.stack([padcols(inputs[n].astype(jnp.float32))
                    for n in other_names]).astype(mm_dtype)          # (n_others, B, Dp)
    wq = params['proj'][query_name]['w'].astype(mm_dtype)            # (Dq, E)
    wop = jnp.stack([padrows(params['proj'][n]['w'])
                     for n in other_names]).astype(mm_dtype)         # (n_others, Dp, E)
    # fold Wv @ Wo in f32, cast once (wq/wk are provably dead for Skv == 1)
    wat = jnp.stack([params['attn'][n]['wv'] @ params['attn'][n]['wo']
                     for n in other_names]).astype(mm_dtype)         # (n_others, E, E)
    w1s = params['final']['w1'].reshape(n_mod, E, 2 * E).astype(mm_dtype)
    w2 = params['final']['w2'].astype(mm_dtype)                      # (2E, E)

    # --- packed (P, E) f32 vector slab ---------------------------------------------------
    pq = params['proj'][query_name]
    rows = [pq['b'], pq['g'], pq['beta']]
    for n in other_names:
        p = params['proj'][n]
        rows += [p['b'], p['g'], p['beta']]
    bo_sum = params['attn'][other_names[0]]['bo']
    for n in other_names[1:]:
        bo_sum = bo_sum + params['attn'][n]['bo']
    rows += [bo_sum, params['query_norm']['g'], params['query_norm']['beta'],
             params['final']['b2'], params['final']['g'], params['final']['beta']]
    vecs = jnp.concatenate([jnp.reshape(r, (1, E)) for r in rows], axis=0).astype(jnp.float32)
    b1 = jnp.reshape(params['final']['b1'], (1, 2 * E)).astype(jnp.float32)

    args = [xq, xo, wq, wop, wat, w1s, w2, vecs, b1]
    in_specs = [_fs(a.shape) for a in args]

    out_shape = (jax.ShapeDtypeStruct((B * Sq, E), jnp.float32),
                 jax.ShapeDtypeStruct((B, (1 + n_others) * E), jnp.float32))
    out_specs = (_fs((B * Sq, E)), _fs((B, (1 + n_others) * E)))

    kernel = _make_fused_kernel(n_others, B, Sq, E, query_pos, mm_dtype)
    behq, pack = pl.pallas_call(
        kernel,
        grid=(1,),
        in_specs=in_specs,
        out_specs=out_specs,
        out_shape=out_shape,
        # TODO(synk): for production B*Sq, add a leading "parallel" grid axis over batch/row
        # tiles so v7x uses both TensorCores; irrelevant at toy shapes (overhead-bound).
        compiler_params=pltpu.CompilerParams(dimension_semantics=("arbitrary",)),
    )(*args)

    fused = pack[:, :E]
    projected = {}
    oi = 0
    for n in modality_order:
        if n == query_name:
            projected[n] = behq.reshape(B, Sq, E)
        else:
            projected[n] = pack[:, (1 + oi) * E:(2 + oi) * E][:, None, :]
            oi += 1
    return {'fused_features': fused, 'modality_features_projected': projected}


# ---------------------------------------------------------------------------
# Parameter init (deterministic, shapes follow the PyTorch module __init__)
# ---------------------------------------------------------------------------
def init_params(key, input_dims, embed_dim, query_name):
    keys = iter(jax.random.split(key, 128))

    def linear(din, dout, bias=True):
        scale = 1.0 / jnp.sqrt(jnp.float32(din))
        w = jax.random.normal(next(keys), (din, dout), jnp.float32) * scale
        b = (jax.random.normal(next(keys), (1, dout), jnp.float32) * 0.01
             if bias else None)
        return w, b

    params = {'proj': {}, 'attn': {}}
    for name, dim in input_dims.items():
        w, b = linear(dim, embed_dim)
        params['proj'][name] = {'w': w, 'b': b,
                                'g': jnp.ones((1, embed_dim), jnp.float32),
                                'beta': jnp.zeros((1, embed_dim), jnp.float32)}

    for name in input_dims:
        if name == query_name:
            continue
        wq, _ = linear(embed_dim, embed_dim, bias=False)   # dead for Skv==1 (kept for fidelity)
        wk, _ = linear(embed_dim, embed_dim, bias=False)   # dead for Skv==1 (kept for fidelity)
        wv, _ = linear(embed_dim, embed_dim, bias=False)
        wo, bo = linear(embed_dim, embed_dim)
        params['attn'][name] = {'wq': wq, 'wk': wk, 'wv': wv, 'wo': wo, 'bo': bo}

    params['query_norm'] = {'g': jnp.ones((1, embed_dim), jnp.float32),
                            'beta': jnp.zeros((1, embed_dim), jnp.float32)}

    fin = len(input_dims) * embed_dim
    w1, b1 = linear(fin, embed_dim * 2)
    w2, b2 = linear(embed_dim * 2, embed_dim)
    params['final'] = {'w1': w1, 'b1': b1, 'w2': w2, 'b2': b2,
                       'g': jnp.ones((1, embed_dim), jnp.float32),
                       'beta': jnp.zeros((1, embed_dim), jnp.float32)}
    return params


# ---------------------------------------------------------------------------
# Pure-JAX f32 reference (full softmax attention, incl. wq/wk) for validation
# ---------------------------------------------------------------------------
def _reference_forward(params, inputs, embed_dim, num_heads, query_name):
    E, hd = embed_dim, embed_dim // num_heads
    projected = {}
    for name, feats in inputs.items():
        p = params['proj'][name]
        x = feats if feats.ndim == 3 else feats[:, None, :]
        y = jnp.maximum(_ln(x @ p['w'] + p['b'], p['g'], p['beta']), 0.0)
        projected[name] = y
    q = projected[query_name]
    B, Sq, _ = q.shape
    terms = [q]
    for name, kv in projected.items():
        if name == query_name:
            continue
        a = params['attn'][name]
        Skv = kv.shape[1]
        qh = (q.reshape(B * Sq, E) @ a['wq']).reshape(B, Sq, num_heads, hd).transpose(0, 2, 1, 3)
        kh = (kv.reshape(B * Skv, E) @ a['wk']).reshape(B, Skv, num_heads, hd).transpose(0, 2, 1, 3)
        vh = (kv.reshape(B * Skv, E) @ a['wv']).reshape(B, Skv, num_heads, hd).transpose(0, 2, 1, 3)
        s = jnp.einsum('bhqd,bhkd->bhqk', qh, kh) * hd ** -0.5
        pr = jax.nn.softmax(s, axis=-1)
        ctx = jnp.einsum('bhqk,bhkd->bhqd', pr, vh).transpose(0, 2, 1, 3).reshape(B, Sq, E)
        terms.append(ctx @ a['wo'] + a['bo'])
    enh = terms[0]
    for t in terms[1:]:
        enh = enh + t
    enh = _ln(enh, params['query_norm']['g'], params['query_norm']['beta'])
    projected[query_name] = enh
    fus = []
    for name in projected:
        f = projected[name]
        fus.append(jnp.mean(f, axis=1) if (name == query_name and f.shape[1] > 1) else f[:, 0, :])
    cat = jnp.concatenate(fus, axis=1)
    fp = params['final']
    h = jnp.maximum(cat @ fp['w1'] + fp['b1'], 0.0)
    fused = _ln(h @ fp['w2'] + fp['b2'], fp['g'], fp['beta'])
    return fused, projected


# ---------------------------------------------------------------------------
# Pure-JAX reference that reproduces the kernel's exact algebra (Skv==1 collapse,
# folded Wv@Wo, bf16 MXU operands with f32 accumulation) -> tight tolerance check.
# ---------------------------------------------------------------------------
def _mm_emul(x, w):
    return jnp.dot(x.astype(jnp.bfloat16), w.astype(jnp.bfloat16),
                   preferred_element_type=jnp.float32)


def _reference_forward_emul(params, inputs, embed_dim, query_name):
    E = embed_dim
    modality_order = [n for n in inputs if n in params['proj']]
    other_names = [n for n in modality_order if n != query_name]
    q = inputs[query_name]
    B, Sq, _ = q.shape
    pq = params['proj'][query_name]
    beh = jnp.maximum(_ln(_mm_emul(q.reshape(B * Sq, -1), pq['w']) + pq['b'],
                          pq['g'], pq['beta']), 0.0)
    others = {}
    for n in other_names:
        p = params['proj'][n]
        others[n] = jnp.maximum(_ln(_mm_emul(inputs[n], p['w']) + p['b'],
                                    p['g'], p['beta']), 0.0)
    ctx = jnp.zeros((B, E), jnp.float32)
    for n in other_names:
        a = params['attn'][n]
        ctx = ctx + _mm_emul(others[n], a['wv'] @ a['wo'])
    for n in other_names:
        ctx = ctx + params['attn'][n]['bo'] / len(other_names) * 0  # placeholder, replaced below
    bo_sum = params['attn'][other_names[0]]['bo']
    for n in other_names[1:]:
        bo_sum = bo_sum + params['attn'][n]['bo']
    ctx = ctx + bo_sum
    enh = _ln(beh.reshape(B, Sq, E) + ctx[:, None, :],
              params['query_norm']['g'], params['query_norm']['beta'])
    beh_mean = jnp.mean(enh, axis=1)
    parts = [beh_mean if n == query_name else others[n] for n in modality_order]
    fp = params['final']
    h = fp['b1']
    for j, part in enumerate(parts):
        h = h + _mm_emul(part, fp['w1'][j * E:(j + 1) * E, :])
    h = jnp.maximum(h, 0.0)
    fused = _ln(_mm_emul(h, fp['w2']) + fp['b2'], fp['g'], fp['beta'])
    return fused, enh, others


# ---------------------------------------------------------------------------
if __name__ == "__main__":
    input_dims = {'behavior': 32, 'vision': 48, 'audio': 24}
    embed_dim = 64
    num_heads = 4
    B, Sq = 2, 8
    query_name = 'behavior'

    key = jax.random.PRNGKey(0)
    kparam, kb, kv_, ka = jax.random.split(key, 4)

    params = init_params(kparam, input_dims, embed_dim, query_name)
    inputs = {
        'behavior': jax.random.normal(kb, (B, Sq, input_dims['behavior']), jnp.float32),
        'vision': jax.random.normal(kv_, (B, input_dims['vision']), jnp.float32),
        'audio': jax.random.normal(ka, (B, input_dims['audio']), jnp.float32),
    }

    out = cross_attention_fusion_forward(params, inputs, embed_dim, num_heads, query_name)
    jax.block_until_ready(out['fused_features'])
    for v in out['modality_features_projected'].values():
        jax.block_until_ready(v)

    assert out['fused_features'].shape == (B, embed_dim)
    assert out['modality_features_projected']['behavior'].shape == (B, Sq, embed_dim)
    assert out['modality_features_projected']['vision'].shape == (B, 1, embed_dim)
    assert out['modality_features_projected']['audio'].shape == (B, 1, embed_dim)

    # Tight check: algebra/implementation must match the bf16-emulating reference closely
    # (same rounding points -> residual is only op-ordering / transcendental diffs).
    em_fused, em_enh, em_others = _reference_forward_emul(params, inputs, embed_dim, query_name)
    e1 = float(jnp.max(jnp.abs(out['fused_features'] - em_fused)))
    e2 = float(jnp.max(jnp.abs(out['modality_features_projected']['behavior'] - em_enh)))
    e3 = max(float(jnp.max(jnp.abs(out['modality_features_projected'][n][:, 0, :] - em_others[n])))
             for n in ('vision', 'audio'))
    assert e1 < 5e-3 and e2 < 5e-3 and e3 < 5e-3, (e1, e2, e3)

    # Loose check vs full-softmax f32 reference: bounds total bf16-operand noise.
    ref_fused, ref_proj = _reference_forward(params, inputs, embed_dim, num_heads, query_name)
    err_f = float(jnp.max(jnp.abs(out['fused_features'] - ref_fused)))
    err_q = float(jnp.max(jnp.abs(out['modality_features_projected']['behavior']
                                  - ref_proj['behavior'])))
    assert err_f < 6e-2 and err_q < 6e-2, (err_f, err_q)

    print("KERNEL_OK")
</pallas_src>

<mosaic_0001>
module attributes {stable_mosaic.version = 11 : i64} {
  func.func @kernel(%arg0: i32, %arg1: memref<16x32xbf16, #tpu.memory_space<vmem>>, %arg2: memref<2x2x48xbf16, #tpu.memory_space<vmem>>, %arg3: memref<32x64xbf16, #tpu.memory_space<vmem>>, %arg4: memref<2x48x64xbf16, #tpu.memory_space<vmem>>, %arg5: memref<2x64x64xbf16, #tpu.memory_space<vmem>>, %arg6: memref<3x64x128xbf16, #tpu.memory_space<vmem>>, %arg7: memref<128x64xbf16, #tpu.memory_space<vmem>>, %arg8: memref<15x64xf32, #tpu.memory_space<vmem>>, %arg9: memref<1x128xf32, #tpu.memory_space<vmem>>, %arg10: memref<16x64xf32, #tpu.memory_space<vmem>>, %arg11: memref<2x192xf32, #tpu.memory_space<vmem>>) attributes {dimension_semantics = [#tpu.dimension_semantics<arbitrary>], iteration_bounds = array<i64: 1>, scalar_prefetch = 0 : i64, scratch_operands = 0 : i64, tpu.core_type = #tpu.core_type<tc>, window_params = [{pipeline_mode = #tpu.pipeline_mode<synchronous>, transform_indices = @transform_0, window_bounds = array<i64: 16, 32>}, {pipeline_mode = #tpu.pipeline_mode<synchronous>, transform_indices = @transform_1, window_bounds = array<i64: 2, 2, 48>}, {pipeline_mode = #tpu.pipeline_mode<synchronous>, transform_indices = @transform_2, window_bounds = array<i64: 32, 64>}, {pipeline_mode = #tpu.pipeline_mode<synchronous>, transform_indices = @transform_3, window_bounds = array<i64: 2, 48, 64>}, {pipeline_mode = #tpu.pipeline_mode<synchronous>, transform_indices = @transform_4, window_bounds = array<i64: 2, 64, 64>}, {pipeline_mode = #tpu.pipeline_mode<synchronous>, transform_indices = @transform_5, window_bounds = array<i64: 3, 64, 128>}, {pipeline_mode = #tpu.pipeline_mode<synchronous>, transform_indices = @transform_6, window_bounds = array<i64: 128, 64>}, {pipeline_mode = #tpu.pipeline_mode<synchronous>, transform_indices = @transform_7, window_bounds = array<i64: 15, 64>}, {pipeline_mode = #tpu.pipeline_mode<synchronous>, transform_indices = @transform_8, window_bounds = array<i64: 1, 128>}, {pipeline_mode = #tpu.pipeline_mode<synchronous>, transform_indices = @transform_9, window_bounds = array<i64: 16, 64>}, {pipeline_mode = #tpu.pipeline_mode<synchronous>, transform_indices = @transform_10, window_bounds = array<i64: 2, 192>}]} {
    %c0 = arith.constant 0 : index
    %c0_0 = arith.constant 0 : index
    %0 = vector.load %arg1[%c0, %c0_0] : memref<16x32xbf16, #tpu.memory_space<vmem>>, vector<16x32xbf16>
    %c0_1 = arith.constant 0 : index
    %c0_2 = arith.constant 0 : index
    %1 = vector.load %arg3[%c0_1, %c0_2] : memref<32x64xbf16, #tpu.memory_space<vmem>>, vector<32x64xbf16>
    %cst = arith.constant dense<0.000000e+00> : vector<16x64xf32>
    %2 = tpu.matmul %0, %1, %cst {dimension_numbers = #tpu.dot_dimension_numbers<[1], [0], [0], [1], [0, 0, 1, 1], [], []>} : vector<16x32xbf16>, vector<32x64xbf16>, vector<16x64xf32> -> vector<16x64xf32>
    %c0_3 = arith.constant 0 : index
    %c0_4 = arith.constant 0 : index
    %3 = vector.load %arg8[%c0_3, %c0_4] : memref<15x64xf32, #tpu.memory_space<vmem>>, vector<1x64xf32>
    %4 = vector.broadcast %3 : vector<1x64xf32> to vector<16x64xf32>
    %5 = arith.addf %2, %4 : vector<16x64xf32>
    %c1 = arith.constant 1 : index
    %c0_5 = arith.constant 0 : index
    %6 = vector.load %arg8[%c1, %c0_5] : memref<15x64xf32, #tpu.memory_space<vmem>>, vector<1x64xf32>
    %c2 = arith.constant 2 : index
    %c0_6 = arith.constant 0 : index
    %7 = vector.load %arg8[%c2, %c0_6] : memref<15x64xf32, #tpu.memory_space<vmem>>, vector<1x64xf32>
    %cst_7 = arith.constant dense<0.000000e+00> : vector<16xf32>
    %8 = vector.multi_reduction <add>, %5, %cst_7 [1] : vector<16x64xf32> to vector<16xf32>
    %9 = vector.shape_cast %8 : vector<16xf32> to vector<16x1xf32>
    %cst_8 = arith.constant 6.400000e+01 : f32
    %10 = vector.broadcast %cst_8 : f32 to vector<16x1xf32>
    %11 = arith.divf %9, %10 : vector<16x1xf32>
    %12 = vector.broadcast %11 : vector<16x1xf32> to vector<16x64xf32>
    %13 = arith.subf %5, %12 : vector<16x64xf32>
    %14 = arith.mulf %13, %13 : vector<16x64xf32>
    %cst_9 = arith.constant dense<0.000000e+00> : vector<16xf32>
    %15 = vector.multi_reduction <add>, %14, %cst_9 [1] : vector<16x64xf32> to vector<16xf32>
    %16 = vector.shape_cast %15 : vector<16xf32> to vector<16x1xf32>
    %cst_10 = arith.constant 6.400000e+01 : f32
    %17 = vector.broadcast %cst_10 : f32 to vector<16x1xf32>
    %18 = arith.divf %16, %17 : vector<16x1xf32>
    %19 = vector.broadcast %11 : vector<16x1xf32> to vector<16x64xf32>
    %20 = arith.subf %5, %19 : vector<16x64xf32>
    %cst_11 = arith.constant 9.99999974E-6 : f32
    %21 = vector.broadcast %cst_11 : f32 to vector<16x1xf32>
    %22 = arith.addf %18, %21 : vector<16x1xf32>
    %23 = math.rsqrt %22 : vector<16x1xf32>
    %24 = vector.broadcast %23 : vector<16x1xf32> to vector<16x64xf32>
    %25 = arith.mulf %20, %24 : vector<16x64xf32>
    %26 = vector.broadcast %6 : vector<1x64xf32> to vector<16x64xf32>
    %27 = arith.mulf %25, %26 : vector<16x64xf32>
    %28 = vector.broadcast %7 : vector<1x64xf32> to vector<16x64xf32>
    %29 = arith.addf %27, %28 : vector<16x64xf32>
    %cst_12 = arith.constant 0.000000e+00 : f32
    %30 = vector.broadcast %cst_12 : f32 to vector<16x64xf32>
    %31 = arith.maximumf %29, %30 : vector<16x64xf32>
    %c0_13 = arith.constant 0 : index
    %c0_14 = arith.constant 0 : index
    %c0_15 = arith.constant 0 : index
    %32 = vector.load %arg2[%c0_13, %c0_14, %c0_15] : memref<2x2x48xbf16, #tpu.memory_space<vmem>>, vector<1x2x48xbf16>
    %33 = vector.shape_cast %32 : vector<1x2x48xbf16> to vector<2x48xbf16>
    %c0_16 = arith.constant 0 : index
    %c0_17 = arith.constant 0 : index
    %c0_18 = arith.constant 0 : index
    %34 = vector.load %arg4[%c0_16, %c0_17, %c0_18] : memref<2x48x64xbf16, #tpu.memory_space<vmem>>, vector<1x48x64xbf16>
    %35 = vector.shape_cast %34 : vector<1x48x64xbf16> to vector<48x64xbf16>
    %cst_19 = arith.constant dense<0.000000e+00> : vector<2x64xf32>
    %36 = tpu.matmul %33, %35, %cst_19 {dimension_numbers = #tpu.dot_dimension_numbers<[1], [0], [0], [1], [0, 0, 1, 1], [], []>} : vector<2x48xbf16>, vector<48x64xbf16>, vector<2x64xf32> -> vector<2x64xf32>
    %c3 = arith.constant 3 : index
    %c0_20 = arith.constant 0 : index
    %37 = vector.load %arg8[%c3, %c0_20] : memref<15x64xf32, #tpu.memory_space<vmem>>, vector<1x64xf32>
    %38 = vector.broadcast %37 : vector<1x64xf32> to vector<2x64xf32>
    %39 = arith.addf %36, %38 : vector<2x64xf32>
    %c4 = arith.constant 4 : index
    %c0_21 = arith.constant 0 : index
    %40 = vector.load %arg8[%c4, %c0_21] : memref<15x64xf32, #tpu.memory_space<vmem>>, vector<1x64xf32>
    %c5 = arith.constant 5 : index
    %c0_22 = arith.constant 0 : index
    %41 = vector.load %arg8[%c5, %c0_22] : memref<15x64xf32, #tpu.memory_space<vmem>>, vector<1x64xf32>
    %cst_23 = arith.constant dense<0.000000e+00> : vector<2xf32>
    %42 = vector.multi_reduction <add>, %39, %cst_23 [1] : vector<2x64xf32> to vector<2xf32>
    %43 = vector.shape_cast %42 : vector<2xf32> to vector<2x1xf32>
    %cst_24 = arith.constant 6.400000e+01 : f32
    %44 = vector.broadcast %cst_24 : f32 to vector<2x1xf32>
    %45 = arith.divf %43, %44 : vector<2x1xf32>
    %46 = vector.broadcast %45 : vector<2x1xf32> to vector<2x64xf32>
    %47 = arith.subf %39, %46 : vector<2x64xf32>
    %48 = arith.mulf %47, %47 : vector<2x64xf32>
    %cst_25 = arith.constant dense<0.000000e+00> : vector<2xf32>
    %49 = vector.multi_reduction <add>, %48, %cst_25 [1] : vector<2x64xf32> to vector<2xf32>
    %50 = vector.shape_cast %49 : vector<2xf32> to vector<2x1xf32>
    %cst_26 = arith.constant 6.400000e+01 : f32
    %51 = vector.broadcast %cst_26 : f32 to vector<2x1xf32>
    %52 = arith.divf %50, %51 : vector<2x1xf32>
    %53 = vector.broadcast %45 : vector<2x1xf32> to vector<2x64xf32>
    %54 = arith.subf %39, %53 : vector<2x64xf32>
    %cst_27 = arith.constant 9.99999974E-6 : f32
    %55 = vector.broadcast %cst_27 : f32 to vector<2x1xf32>
    %56 = arith.addf %52, %55 : vector<2x1xf32>
    %57 = math.rsqrt %56 : vector<2x1xf32>
    %58 = vector.broadcast %57 : vector<2x1xf32> to vector<2x64xf32>
    %59 = arith.mulf %54, %58 : vector<2x64xf32>
    %60 = vector.broadcast %40 : vector<1x64xf32> to vector<2x64xf32>
    %61 = arith.mulf %59, %60 : vector<2x64xf32>
    %62 = vector.broadcast %41 : vector<1x64xf32> to vector<2x64xf32>
    %63 = arith.addf %61, %62 : vector<2x64xf32>
    %cst_28 = arith.constant 0.000000e+00 : f32
    %64 = vector.broadcast %cst_28 : f32 to vector<2x64xf32>
    %65 = arith.maximumf %63, %64 : vector<2x64xf32>
    %66 = arith.truncf %65 : vector<2x64xf32> to vector<2x64xbf16>
    %c1_29 = arith.constant 1 : index
    %c0_30 = arith.constant 0 : index
    %c0_31 = arith.constant 0 : index
    %67 = vector.load %arg2[%c1_29, %c0_30, %c0_31] : memref<2x2x48xbf16, #tpu.memory_space<vmem>>, vector<1x2x48xbf16>
    %68 = vector.shape_cast %67 : vector<1x2x48xbf16> to vector<2x48xbf16>
    %c1_32 = arith.constant 1 : index
    %c0_33 = arith.constant 0 : index
    %c0_34 = arith.constant 0 : index
    %69 = vector.load %arg4[%c1_32, %c0_33, %c0_34] : memref<2x48x64xbf16, #tpu.memory_space<vmem>>, vector<1x48x64xbf16>
    %70 = vector.shape_cast %69 : vector<1x48x64xbf16> to vector<48x64xbf16>
    %cst_35 = arith.constant dense<0.000000e+00> : vector<2x64xf32>
    %71 = tpu.matmul %68, %70, %cst_35 {dimension_numbers = #tpu.dot_dimension_numbers<[1], [0], [0], [1], [0, 0, 1, 1], [], []>} : vector<2x48xbf16>, vector<48x64xbf16>, vector<2x64xf32> -> vector<2x64xf32>
    %c6 = arith.constant 6 : index
    %c0_36 = arith.constant 0 : index
    %72 = vector.load %arg8[%c6, %c0_36] : memref<15x64xf32, #tpu.memory_space<vmem>>, vector<1x64xf32>
    %73 = vector.broadcast %72 : vector<1x64xf32> to vector<2x64xf32>
    %74 = arith.addf %71, %73 : vector<2x64xf32>
    %c7 = arith.constant 7 : index
    %c0_37 = arith.constant 0 : index
    %75 = vector.load %arg8[%c7, %c0_37] : memref<15x64xf32, #tpu.memory_space<vmem>>, vector<1x64xf32>
    %c8 = arith.constant 8 : index
    %c0_38 = arith.constant 0 : index
    %76 = vector.load %arg8[%c8, %c0_38] : memref<15x64xf32, #tpu.memory_space<vmem>>, vector<1x64xf32>
    %cst_39 = arith.constant dense<0.000000e+00> : vector<2xf32>
    %77 = vector.multi_reduction <add>, %74, %cst_39 [1] : vector<2x64xf32> to vector<2xf32>
    %78 = vector.shape_cast %77 : vector<2xf32> to vector<2x1xf32>
    %cst_40 = arith.constant 6.400000e+01 : f32
    %79 = vector.broadcast %cst_40 : f32 to vector<2x1xf32>
    %80 = arith.divf %78, %79 : vector<2x1xf32>
    %81 = vector.broadcast %80 : vector<2x1xf32> to vector<2x64xf32>
    %82 = arith.subf %74, %81 : vector<2x64xf32>
    %83 = arith.mulf %82, %82 : vector<2x64xf32>
    %cst_41 = arith.constant dense<0.000000e+00> : vector<2xf32>
    %84 = vector.multi_reduction <add>, %83, %cst_41 [1] : vector<2x64xf32> to vector<2xf32>
    %85 = vector.shape_cast %84 : vector<2xf32> to vector<2x1xf32>
    %cst_42 = arith.constant 6.400000e+01 : f32
    %86 = vector.broadcast %cst_42 : f32 to vector<2x1xf32>
    %87 = arith.divf %85, %86 : vector<2x1xf32>
    %88 = vector.broadcast %80 : vector<2x1xf32> to vector<2x64xf32>
    %89 = arith.subf %74, %88 : vector<2x64xf32>
    %cst_43 = arith.constant 9.99999974E-6 : f32
    %90 = vector.broadcast %cst_43 : f32 to vector<2x1xf32>
    %91 = arith.addf %87, %90 : vector<2x1xf32>
    %92 = math.rsqrt %91 : vector<2x1xf32>
    %93 = vector.broadcast %92 : vector<2x1xf32> to vector<2x64xf32>
    %94 = arith.mulf %89, %93 : vector<2x64xf32>
    %95 = vector.broadcast %75 : vector<1x64xf32> to vector<2x64xf32>
    %96 = arith.mulf %94, %95 : vector<2x64xf32>
    %97 = vector.broadcast %76 : vector<1x64xf32> to vector<2x64xf32>
    %98 = arith.addf %96, %97 : vector<2x64xf32>
    %cst_44 = arith.constant 0.000000e+00 : f32
    %99 = vector.broadcast %cst_44 : f32 to vector<2x64xf32>
    %100 = arith.maximumf %98, %99 : vector<2x64xf32>
    %101 = arith.truncf %100 : vector<2x64xf32> to vector<2x64xbf16>
    %c9 = arith.constant 9 : index
    %c0_45 = arith.constant 0 : index
    %102 = vector.load %arg8[%c9, %c0_45] : memref<15x64xf32, #tpu.memory_space<vmem>>, vector<1x64xf32>
    %c10 = arith.constant 10 : index
    %c0_46 = arith.constant 0 : index
    %103 = vector.load %arg8[%c10, %c0_46] : memref<15x64xf32, #tpu.memory_space<vmem>>, vector<1x64xf32>
    %c11 = arith.constant 11 : index
    %c0_47 = arith.constant 0 : index
    %104 = vector.load %arg8[%c11, %c0_47] : memref<15x64xf32, #tpu.memory_space<vmem>>, vector<1x64xf32>
    %c12 = arith.constant 12 : index
    %c0_48 = arith.constant 0 : index
    %105 = vector.load %arg8[%c12, %c0_48] : memref<15x64xf32, #tpu.memory_space<vmem>>, vector<1x64xf32>
    %c13 = arith.constant 13 : index
    %c0_49 = arith.constant 0 : index
    %106 = vector.load %arg8[%c13, %c0_49] : memref<15x64xf32, #tpu.memory_space<vmem>>, vector<1x64xf32>
    %c14 = arith.constant 14 : index
    %c0_50 = arith.constant 0 : index
    %107 = vector.load %arg8[%c14, %c0_50] : memref<15x64xf32, #tpu.memory_space<vmem>>, vector<1x64xf32>
    %cst_51 = arith.constant 0.000000e+00 : f32
    %108 = vector.broadcast %cst_51 : f32 to vector<2x64xf32>
    %c0_52 = arith.constant 0 : index
    %c0_53 = arith.constant 0 : index
    %c0_54 = arith.constant 0 : index
    %109 = vector.load %arg5[%c0_52, %c0_53, %c0_54] : memref<2x64x64xbf16, #tpu.memory_space<vmem>>, vector<1x64x64xbf16>
    %110 = vector.shape_cast %109 : vector<1x64x64xbf16> to vector<64x64xbf16>
    %cst_55 = arith.constant dense<0.000000e+00> : vector<2x64xf32>
    %111 = tpu.matmul %66, %110, %cst_55 {dimension_numbers = #tpu.dot_dimension_numbers<[1], [0], [0], [1], [0, 0, 1, 1], [], []>} : vector<2x64xbf16>, vector<64x64xbf16>, vector<2x64xf32> -> vector<2x64xf32>
    %112 = arith.addf %108, %111 : vector<2x64xf32>
    %c1_56 = arith.constant 1 : index
    %c0_57 = arith.constant 0 : index
    %c0_58 = arith.constant 0 : index
    %113 = vector.load %arg5[%c1_56, %c0_57, %c0_58] : memref<2x64x64xbf16, #tpu.memory_space<vmem>>, vector<1x64x64xbf16>
    %114 = vector.shape_cast %113 : vector<1x64x64xbf16> to vector<64x64xbf16>
    %cst_59 = arith.constant dense<0.000000e+00> : vector<2x64xf32>
    %115 = tpu.matmul %101, %114, %cst_59 {dimension_numbers = #tpu.dot_dimension_numbers<[1], [0], [0], [1], [0, 0, 1, 1], [], []>} : vector<2x64xbf16>, vector<64x64xbf16>, vector<2x64xf32> -> vector<2x64xf32>
    %116 = arith.addf %112, %115 : vector<2x64xf32>
    %117 = vector.broadcast %102 : vector<1x64xf32> to vector<2x64xf32>
    %118 = arith.addf %116, %117 : vector<2x64xf32>
    %119 = vector.shape_cast %118 : vector<2x64xf32> to vector<2x1x64xf32>
    %120 = vector.shape_cast %119 : vector<2x1x64xf32> to vector<2x1x64xf32>
    %121 = vector.broadcast %120 : vector<2x1x64xf32> to vector<2x8x64xf32>
    %122 = vector.shape_cast %121 : vector<2x8x64xf32> to vector<16x64xf32>
    %123 = arith.addf %31, %122 : vector<16x64xf32>
    %cst_60 = arith.constant dense<0.000000e+00> : vector<16xf32>
    %124 = vector.multi_reduction <add>, %123, %cst_60 [1] : vector<16x64xf32> to vector<16xf32>
    %125 = vector.shape_cast %124 : vector<16xf32> to vector<16x1xf32>
    %cst_61 = arith.constant 6.400000e+01 : f32
    %126 = vector.broadcast %cst_61 : f32 to vector<16x1xf32>
    %127 = arith.divf %125, %126 : vector<16x1xf32>
    %128 = vector.broadcast %127 : vector<16x1xf32> to vector<16x64xf32>
    %129 = arith.subf %123, %128 : vector<16x64xf32>
    %130 = arith.mulf %129, %129 : vector<16x64xf32>
    %cst_62 = arith.constant dense<0.000000e+00> : vector<16xf32>
    %131 = vector.multi_reduction <add>, %130, %cst_62 [1] : vector<16x64xf32> to vector<16xf32>
    %132 = vector.shape_cast %131 : vector<16xf32> to vector<16x1xf32>
    %cst_63 = arith.constant 6.400000e+01 : f32
    %133 = vector.broadcast %cst_63 : f32 to vector<16x1xf32>
    %134 = arith.divf %132, %133 : vector<16x1xf32>
    %135 = vector.broadcast %127 : vector<16x1xf32> to vector<16x64xf32>
    %136 = arith.subf %123, %135 : vector<16x64xf32>
    %cst_64 = arith.constant 9.99999974E-6 : f32
    %137 = vector.broadcast %cst_64 : f32 to vector<16x1xf32>
    %138 = arith.addf %134, %137 : vector<16x1xf32>
    %139 = math.rsqrt %138 : vector<16x1xf32>
    %140 = vector.broadcast %139 : vector<16x1xf32> to vector<16x64xf32>
    %141 = arith.mulf %136, %140 : vector<16x64xf32>
    %142 = vector.broadcast %103 : vector<1x64xf32> to vector<16x64xf32>
    %143 = arith.mulf %141, %142 : vector<16x64xf32>
    %144 = vector.broadcast %104 : vector<1x64xf32> to vector<16x64xf32>
    %145 = arith.addf %143, %144 : vector<16x64xf32>
    %c0_65 = arith.constant 0 : index
    %c0_66 = arith.constant 0 : index
    %146 = vector.load %arg10[%c0_65, %c0_66] : memref<16x64xf32, #tpu.memory_space<vmem>>, vector<16x64xf32>
    tpu.vector_store %arg10[%c0_65, %c0_66], %145 {strides = array<i32>} : memref<16x64xf32, #tpu.memory_space<vmem>>, vector<16x64xf32>,
    %147 = vector.shape_cast %145 : vector<16x64xf32> to vector<2x8x64xf32>
    %cst_67 = arith.constant dense<0.000000e+00> : vector<2x64xf32>
    %148 = vector.multi_reduction <add>, %147, %cst_67 [1] : vector<2x8x64xf32> to vector<2x64xf32>
    %cst_68 = arith.constant 8.000000e+00 : f32
    %149 = vector.broadcast %cst_68 : f32 to vector<2x64xf32>
    %150 = arith.divf %148, %149 : vector<2x64xf32>
    %151 = arith.truncf %150 : vector<2x64xf32> to vector<2x64xbf16>
    %c0_69 = arith.constant 0 : index
    %c0_70 = arith.constant 0 : index
    %152 = vector.load %arg9[%c0_69, %c0_70] : memref<1x128xf32, #tpu.memory_space<vmem>>, vector<1x128xf32>
    %c0_71 = arith.constant 0 : index
    %c0_72 = arith.constant 0 : index
    %c0_73 = arith.constant 0 : index
    %153 = vector.load %arg6[%c0_71, %c0_72, %c0_73] : memref<3x64x128xbf16, #tpu.memory_space<vmem>>, vector<1x64x128xbf16>
    %154 = vector.shape_cast %153 : vector<1x64x128xbf16> to vector<64x128xbf16>
    %cst_74 = arith.constant dense<0.000000e+00> : vector<2x128xf32>
    %155 = tpu.matmul %151, %154, %cst_74 {dimension_numbers = #tpu.dot_dimension_numbers<[1], [0], [0], [1], [0, 0, 1, 1], [], []>} : vector<2x64xbf16>, vector<64x128xbf16>, vector<2x128xf32> -> vector<2x128xf32>
    %156 = vector.broadcast %152 : vector<1x128xf32> to vector<2x128xf32>
    %157 = arith.addf %156, %155 : vector<2x128xf32>
    %c1_75 = arith.constant 1 : index
    %c0_76 = arith.constant 0 : index
    %c0_77 = arith.constant 0 : index
    %158 = vector.load %arg6[%c1_75, %c0_76, %c0_77] : memref<3x64x128xbf16, #tpu.memory_space<vmem>>, vector<1x64x128xbf16>
    %159 = vector.shape_cast %158 : vector<1x64x128xbf16> to vector<64x128xbf16>
    %cst_78 = arith.constant dense<0.000000e+00> : vector<2x128xf32>
    %160 = tpu.matmul %66, %159, %cst_78 {dimension_numbers = #tpu.dot_dimension_numbers<[1], [0], [0], [1], [0, 0, 1, 1], [], []>} : vector<2x64xbf16>, vector<64x128xbf16>, vector<2x128xf32> -> vector<2x128xf32>
    %161 = arith.addf %157, %160 : vector<2x128xf32>
    %c2_79 = arith.constant 2 : index
    %c0_80 = arith.constant 0 : index
    %c0_81 = arith.constant 0 : index
    %162 = vector.load %arg6[%c2_79, %c0_80, %c0_81] : memref<3x64x128xbf16, #tpu.memory_space<vmem>>, vector<1x64x128xbf16>
    %163 = vector.shape_cast %162 : vector<1x64x128xbf16> to vector<64x128xbf16>
    %cst_82 = arith.constant dense<0.000000e+00> : vector<2x128xf32>
    %164 = tpu.matmul %101, %163, %cst_82 {dimension_numbers = #tpu.dot_dimension_numbers<[1], [0], [0], [1], [0, 0, 1, 1], [], []>} : vector<2x64xbf16>, vector<64x128xbf16>, vector<2x128xf32> -> vector<2x128xf32>
    %165 = arith.addf %161, %164 : vector<2x128xf32>
    %cst_83 = arith.constant 0.000000e+00 : f32
    %166 = vector.broadcast %cst_83 : f32 to vector<2x128xf32>
    %167 = arith.maximumf %165, %166 : vector<2x128xf32>
    %168 = arith.truncf %167 : vector<2x128xf32> to vector<2x128xbf16>
    %c0_84 = arith.constant 0 : index
    %c0_85 = arith.constant 0 : index
    %169 = vector.load %arg7[%c0_84, %c0_85] : memref<128x64xbf16, #tpu.memory_space<vmem>>, vector<128x64xbf16>
    %cst_86 = arith.constant dense<0.000000e+00> : vector<2x64xf32>
    %170 = tpu.matmul %168, %169, %cst_86 {dimension_numbers = #tpu.dot_dimension_numbers<[1], [0], [0], [1], [0, 0, 1, 1], [], []>} : vector<2x128xbf16>, vector<128x64xbf16>, vector<2x64xf32> -> vector<2x64xf32>
    %171 = vector.broadcast %105 : vector<1x64xf32> to vector<2x64xf32>
    %172 = arith.addf %170, %171 : vector<2x64xf32>
    %cst_87 = arith.constant dense<0.000000e+00> : vector<2xf32>
    %173 = vector.multi_reduction <add>, %172, %cst_87 [1] : vector<2x64xf32> to vector<2xf32>
    %174 = vector.shape_cast %173 : vector<2xf32> to vector<2x1xf32>
    %cst_88 = arith.constant 6.400000e+01 : f32
    %175 = vector.broadcast %cst_88 : f32 to vector<2x1xf32>
    %176 = arith.divf %174, %175 : vector<2x1xf32>
    %177 = vector.broadcast %176 : vector<2x1xf32> to vector<2x64xf32>
    %178 = arith.subf %172, %177 : vector<2x64xf32>
    %179 = arith.mulf %178, %178 : vector<2x64xf32>
    %cst_89 = arith.constant dense<0.000000e+00> : vector<2xf32>
    %180 = vector.multi_reduction <add>, %179, %cst_89 [1] : vector<2x64xf32> to vector<2xf32>
    %181 = vector.shape_cast %180 : vector<2xf32> to vector<2x1xf32>
    %cst_90 = arith.constant 6.400000e+01 : f32
    %182 = vector.broadcast %cst_90 : f32 to vector<2x1xf32>
    %183 = arith.divf %181, %182 : vector<2x1xf32>
    %184 = vector.broadcast %176 : vector<2x1xf32> to vector<2x64xf32>
    %185 = arith.subf %172, %184 : vector<2x64xf32>
    %cst_91 = arith.constant 9.99999974E-6 : f32
    %186 = vector.broadcast %cst_91 : f32 to vector<2x1xf32>
    %187 = arith.addf %183, %186 : vector<2x1xf32>
    %188 = math.rsqrt %187 : vector<2x1xf32>
    %189 = vector.broadcast %188 : vector<2x1xf32> to vector<2x64xf32>
    %190 = arith.mulf %185, %189 : vector<2x64xf32>
    %191 = vector.broadcast %106 : vector<1x64xf32> to vector<2x64xf32>
    %192 = arith.mulf %190, %191 : vector<2x64xf32>
    %193 = vector.broadcast %107 : vector<1x64xf32> to vector<2x64xf32>
    %194 = arith.addf %192, %193 : vector<2x64xf32>
    %c0_92 = arith.constant 0 : index
    %c0_93 = arith.constant 0 : index
    %195 = vector.load %arg11[%c0_92, %c0_93] : memref<2x192xf32, #tpu.memory_space<vmem>>, vector<2x64xf32>
    tpu.vector_store %arg11[%c0_92, %c0_93], %194 {strides = array<i32>} : memref<2x192xf32, #tpu.memory_space<vmem>>, vector<2x64xf32>,
    %c0_94 = arith.constant 0 : index
    %c64 = arith.constant 64 : index
    %196 = vector.load %arg11[%c0_94, %c64] : memref<2x192xf32, #tpu.memory_space<vmem>>, vector<2x64xf32>
    tpu.vector_store %arg11[%c0_94, %c64], %65 {strides = array<i32>} : memref<2x192xf32, #tpu.memory_space<vmem>>, vector<2x64xf32>,
    %c0_95 = arith.constant 0 : index
    %c128 = arith.constant 128 : index
    %197 = vector.load %arg11[%c0_95, %c128] : memref<2x192xf32, #tpu.memory_space<vmem>>, vector<2x64xf32>
    tpu.vector_store %arg11[%c0_95, %c128], %100 {strides = array<i32>} : memref<2x192xf32, #tpu.memory_space<vmem>>, vector<2x64xf32>,
    return
  }
  func.func @transform_0(%arg0: i32) -> (i32, i32) {
    %c0_i32 = arith.constant 0 : i32
    %c0_i32_0 = arith.constant 0 : i32
    %c0_i32_1 = arith.constant 0 : i32
    return %c0_i32, %c0_i32_0 : i32, i32
  }
  func.func @transform_1(%arg0: i32) -> (i32, i32, i32) {
    %c0_i32 = arith.constant 0 : i32
    %c0_i32_0 = arith.constant 0 : i32
    %c0_i32_1 = arith.constant 0 : i32
    %c0_i32_2 = arith.constant 0 : i32
    return %c0_i32, %c0_i32_0, %c0_i32_1 : i32, i32, i32
  }
  func.func @transform_2(%arg0: i32) -> (i32, i32) {
    %c0_i32 = arith.constant 0 : i32
    %c0_i32_0 = arith.constant 0 : i32
    %c0_i32_1 = arith.constant 0 : i32
    return %c0_i32, %c0_i32_0 : i32, i32
  }
  func.func @transform_3(%arg0: i32) -> (i32, i32, i32) {
    %c0_i32 = arith.constant 0 : i32
    %c0_i32_0 = arith.constant 0 : i32
    %c0_i32_1 = arith.constant 0 : i32
    %c0_i32_2 = arith.constant 0 : i32
    return %c0_i32, %c0_i32_0, %c0_i32_1 : i32, i32, i32
  }
  func.func @transform_4(%arg0: i32) -> (i32, i32, i32) {
    %c0_i32 = arith.constant 0 : i32
    %c0_i32_0 = arith.constant 0 : i32
    %c0_i32_1 = arith.constant 0 : i32
    %c0_i32_2 = arith.constant 0 : i32
    return %c0_i32, %c0_i32_0, %c0_i32_1 : i32, i32, i32
  }
  func.func @transform_5(%arg0: i32) -> (i32, i32, i32) {
    %c0_i32 = arith.constant 0 : i32
    %c0_i32_0 = arith.constant 0 : i32
    %c0_i32_1 = arith.constant 0 : i32
    %c0_i32_2 = arith.constant 0 : i32
    return %c0_i32, %c0_i32_0, %c0_i32_1 : i32, i32, i32
  }
  func.func @transform_6(%arg0: i32) -> (i32, i32) {
    %c0_i32 = arith.constant 0 : i32
    %c0_i32_0 = arith.constant 0 : i32
    %c0_i32_1 = arith.constant 0 : i32
    return %c0_i32, %c0_i32_0 : i32, i32
  }
  func.func @transform_7(%arg0: i32) -> (i32, i32) {
    %c0_i32 = arith.constant 0 : i32
    %c0_i32_0 = arith.constant 0 : i32
    %c0_i32_1 = arith.constant 0 : i32
    return %c0_i32, %c0_i32_0 : i32, i32
  }
  func.func @transform_8(%arg0: i32) -> (i32, i32) {
    %c0_i32 = arith.constant 0 : i32
    %c0_i32_0 = arith.constant 0 : i32
    %c0_i32_1 = arith.constant 0 : i32
    return %c0_i32, %c0_i32_0 : i32, i32
  }
  func.func @transform_9(%arg0: i32) -> (i32, i32) {
    %c0_i32 = arith.constant 0 : i32
    %c0_i32_0 = arith.constant 0 : i32
    %c0_i32_1 = arith.constant 0 : i32
    return %c0_i32, %c0_i32_0 : i32, i32
  }
  func.func @transform_10(%arg0: i32) -> (i32, i32) {
    %c0_i32 = arith.constant 0 : i32
    %c0_i32_0 = arith.constant 0 : i32
    %c0_i32_1 = arith.constant 0 : i32
    return %c0_i32, %c0_i32_0 : i32, i32
  }
}

</mosaic_0001>

<bundles_post_ra>
// kernel: tpu_custom_call.1
= control target key start
LH: loop header
LB: loop body
LE: loop exit
PB: predicated region body
PF: predicated region fallthrough
CT: control target
= control target key end

     0   :  { %16 = vsyncpa [#allocation3], 0  ;;  %s1545_s0 = inlined_call_operand.hbm [shape: bf16[16,32], index: 0, kind: input, shape index: {}]   ;;  %s1546_s1 = inlined_call_operand.vmem [shape: bf16[2,2,48], index: 1, kind: input, shape index: {}]   ;;  %s1547_s2 = inlined_call_operand.hbm [shape: bf16[32,64], index: 2, kind: input, shape index: {}]   ;;  %s1548_s3 = inlined_call_operand.hbm [shape: bf16[2,48,64], index: 3, kind: input, shape index: {}]   ;;  %s1549_s4 = inlined_call_operand.hbm [shape: bf16[2,64,64], index: 4, kind: input, shape index: {}]   ;;  %s1550_s5 = inlined_call_operand.vmem [shape: bf16[3,64,128], index: 5, kind: input, shape index: {}]   ;;  %s1551_s6 = inlined_call_operand.vmem [shape: bf16[128,64], index: 6, kind: input, shape index: {}]   ;;  %s1552_s7 = inlined_call_operand.hbm [shape: f32[15,64], index: 7, kind: input, shape index: {}]   ;;  %s1553_s8 = inlined_call_operand.vmem [shape: f32[1,128], index: 8, kind: input, shape index: {}]   ;;  %s1554_s9 = inlined_call_operand.hbm [shape: f32[16,64], index: 9, kind: output, shape index: {0}]   ;;  %s1555_s10 = inlined_call_operand.hbm [shape: f32[2,192], index: 10, kind: output, shape index: {1}]  }
   0x1   :  { %17 = vsyncpa [#allocation6], 0 }
   0x2   :  { %18 = vsyncpa [#allocation9], 0 }
   0x3   :  { %19 = vsyncpa [#allocation4], 0 }
   0x4   :  { %20 = vsyncpa [#allocation13], 0  ;;  %s40_s15 = sshll.u32 %s1547_s2, 4  ;;  %s1300_s16 = smov [#allocation5]   ;;  %s41_s15 = int_to_ptr.hbm [resolvable:$true] %s40_s15 }
   0x5   :  { %s42_s17 = sshll.u32 %s1300_s16, 4  ;;  %s66_s20 = sshll.u32 %s1549_s4, 4  ;;  %s43_s17 = int_to_ptr.vmem [resolvable:$true] %s42_s17  ;;  %s67_s20 = int_to_ptr.hbm [resolvable:$true] %s66_s20 }
   0x6   :  { %s1301_s21 = smov 64   ;;  %s1302_s22 = smov 4  }
   0x7   :  { %48 = dma.hbm_to_vmem [thread:$0]  %s41_s15, 256, %s43_s17, [#allocation6], %s1301_s21, %s1301_s21, %s1302_s22  }
   0x8   :  { %s1303_s23 = smov [#allocation8]   ;;  %s25_s2 = sshll.u32 %s1545_s0, 4  ;;  %s26_s2 = int_to_ptr.hbm [resolvable:$true] %s25_s2 }
   0x9   :  { %s68_s24 = sshll.u32 %s1303_s23, 4  ;;  %s53_s4 = sshll.u32 %s1548_s3, 4  ;;  %s69_s24 = int_to_ptr.vmem [resolvable:$true] %s68_s24  ;;  %s54_s4 = int_to_ptr.hbm [resolvable:$true] %s53_s4 }
   0xa   :  { %74 = dma.hbm_to_vmem [thread:$0]  %s67_s20, 1024, %s69_s24, [#allocation9], %s1301_s21, %s1301_s21, %s1302_s22  }
   0xb   :  { %s1304_s29 = smov [#allocation2]   ;;  %s1305_s11 = smov [#allocation7]  }
   0xc   :  { %s27_s30 = sshll.u32 %s1304_s29, 4  ;;  %s55_s12 = sshll.u32 %s1305_s11, 4  ;;  %s28_s30 = int_to_ptr.vmem [resolvable:$true] %s27_s30  ;;  %s56_s12 = int_to_ptr.vmem [resolvable:$true] %s55_s12 }
   0xd   :  { %33 = dma.hbm_to_vmem [thread:$0]  %s26_s2, 128, %s28_s30, [#allocation3], %s1301_s21, %s1301_s21, %s1302_s22  }
   0xe   :  { %s83_s14 = sshll.u32 %s1552_s7, 4  ;;  %s1306_s15 = smov [#allocation10]   ;;  %s84_s14 = int_to_ptr.hbm [resolvable:$true] %s83_s14 }
   0xf   :  { %61 = dma.hbm_to_vmem [thread:$0]  %s54_s4, 768, %s56_s12, [#allocation6], %s1301_s21, %s1301_s21, %s1302_s22  }
  0x10   :  { %s85_s3 = sshll.u32 %s1306_s15, 4  ;;  %s1307_s16 = smov 128   ;;  %s86_s3 = int_to_ptr.vmem [resolvable:$true] %s85_s3 }
  0x11   :  { %s1308_s17 = smov 8  }
  0x12   :  { %91 = dma.hbm_to_vmem [thread:$0]  %s84_s14, 256, %s86_s3, [#allocation9], %s1307_s16, %s1307_s16, %s1308_s17  }
  0x13   :  { %1290 = dma.done.wait [#allocation3], 128  }
  0x14   :  { %1291 = vsyncadd [#allocation3], 4294967168 }
  0x15   :  { %1292 = dma.done.wait [#allocation6], 1024  }
  0x16   :  { %1293 = vsyncadd [#allocation6], 4294966272 }
  0x17   :  { %1294 = dma.done.wait [#allocation9], 1280  }
  0x18   :  { %1295 = vsyncadd [#allocation9], 4294966016  ;;  %v1040_v0 = vld [vmem:[#allocation5 + $0x8] sm:$0xff]  ;;  %v1046_v1 = vld [vmem:[#allocation7 + $0x28] sm:$0xff]  ;;  %vm140_vm0 = vcmask 261120   ;;  %vm247_vm1 = vcmask 392192  }
  0x19   :  { %v1043_v2 = vld [vmem:[#allocation7 + $0x10] sm:$0xff]  ;;  %150 = vmatpush.bf16.msra.mxu0 %v1040_v0  ;;  %332 = vmatpush.bf16.msra.mxu2 %v1046_v1  ;;  %v1045_v4 = vld [vmem:[#allocation7 + $0x20] sm:$0xff]  ;;  %v1038_v5 = vld [vmem:[#allocation2] sm:$0xff]  ;;  %vm160_vm2 = vcmask 523264   ;;  %vm266_vm3 = vcmask 517120   ;;  %v1309_v28 = vmov 64.0  }
  0x1a   :  { %v1039_v3 = vld [vmem:[#allocation5] sm:$0xff]  ;;  %256 = vmatpush.bf16.msra.mxu1 %v1043_v2  ;;  %v1042_v6 = vld [vmem:[#allocation7 + $0x8] sm:$0xff]  ;;  %v1044_v7 = vld [vmem:[#allocation7 + $0x18] sm:$0xff]  ;;  %1104 = vrcp.f32 %v1309_v28  ;;  %s834_s7 = sshll.u32 %s1554_s9, 4  ;;  %s1312_s9 = smov [#allocation12]   ;;  %s835_s7 = int_to_ptr.hbm [resolvable:$true] %s834_s7 }
  0x1b   :  { %v1041_v8 = vld [vmem:[#allocation7] sm:$0xff]  ;;  %v891_v9 = vld [vmem:[%s1546_s1 + $0x1] sm:$0x1]  ;;  %v220_v10 = vld [vmem:[%s1546_s1] sm:$0x1]  ;;  %s848_s18 = sshll.u32 %s1555_s10, 4  ;;  %s849_s18 = int_to_ptr.hbm [resolvable:$true] %s848_s18 }
  0x1c   :  { %v1088_v11 = vld [vmem:[#allocation10] ss:$0 sm:$0xff]  ;;  %v1090_v16 = vld [vmem:[#allocation10 + $0x6] ss:$0 sm:$0xff]  ;;  %v1089_v20 = vld [vmem:[#allocation10 + $0x3] ss:$0 sm:$0xff] }
  0x1d   :  { %151 = vmatpush.bf16.msra.mxu0 %v1039_v3  ;;  %333 = vmatpush.bf16.msra.mxu2 %v1045_v4  ;;  %v1054_v55 = vld [vmem:[#allocation8 + $0x38] sm:$0xff]  ;;  %v1053_v56 = vld [vmem:[#allocation8 + $0x30] sm:$0xff]  ;;  %v1052_v58 = vld [vmem:[#allocation8 + $0x28] sm:$0xff] }
  0x1e   :  { %257 = vmatpush.bf16.msra.mxu1 %v1042_v6  ;;  %424 = vmatpush.bf16.msra.mxu3 %v1054_v55  ;;  %v1050_v57 = vld [vmem:[#allocation8 + $0x18] sm:$0xff]  ;;  %v1062_v59 = vld [vmem:[%s1550_s5 + $0x38] sm:$0xff]  ;;  %v1051_v61 = vld [vmem:[#allocation8 + $0x20] sm:$0xff] }
  0x1f   :  { %v1049_v60 = vld [vmem:[#allocation8 + $0x10] sm:$0xff]  ;;  %v1061_v62 = vld [vmem:[%s1550_s5 + $0x30] sm:$0xff]  ;;  %v1060_v1 = vld [vmem:[%s1550_s5 + $0x28] sm:$0xff] }
  0x20   :  { %877 = vmatmul.msk.bf16.vlgmr.msra.gmra.mxu0 %vm140_vm0, %v1038_v5  ;;  %v1105_v29 = vpop.eup %1104  ;;  %v1048_v0 = vld [vmem:[#allocation8 + $0x8] sm:$0xff]  ;;  %v1066_v2 = vld [vmem:[%s1550_s5 + $0x58] sm:$0xff]  ;;  %v1047_v5 = vld [vmem:[#allocation8] sm:$0xff] }
  0x21   :  { %334 = vmatpush.bf16.msra.mxu2 %v1044_v7  ;;  %v168_v30 = vmul.f32 64.0, %v1105_v29  ;;  %vm172_vm4 = vweird.f32 %v1105_v29  ;;  %v1059_v6 = vld [vmem:[%s1550_s5 + $0x20] sm:$0xff]  ;;  %v1065_v7 = vld [vmem:[%s1550_s5 + $0x50] sm:$0xff] }
  0x22   :  { %258 = vmatpush.bf16.msra.mxu1 %v1041_v8  ;;  %425 = vmatpush.bf16.msra.mxu3 %v1053_v56 }
  0x23   :  { %v169_v31 = vsub.f32 1.0, %v168_v30 }
  0x24   :  { %904 = vmatmul.msk.bf16.vlgmr.msra.gmra.mxu2 %vm247_vm1, %v891_v9  ;;  %v1064_v9 = vld [vmem:[%s1550_s5 + $0x48] sm:$0xff] }
  0x25   :  { %890 = vmatmul.msk.bf16.vlgmr.msra.gmra.mxu1 %vm247_vm1, %v220_v10  ;;  %v170_v32 = vmul.f32 %v1105_v29, %v169_v31  ;;  %657 = vmatpush.bf16.msrb.mxu2 %v1062_v59  ;;  %v1091_v31 = vld [vmem:[#allocation10 + $0x4] ss:$0 sm:$0xff] }
  0x26   :  { %464 = vmatpush.bf16.msrb.mxu1 %v1050_v57  ;;  %426 = vmatpush.bf16.msra.mxu3 %v1052_v58 }
  0x27   :  { %v171_v33 = vadd.f32 %v1105_v29, %v170_v32 }
  0x29   :  { %v1404_v34 = vsel %vm172_vm4, %v1105_v29, %v171_v33  ;;  %658 = vmatpush.bf16.msrb.mxu2 %v1061_v62 }
  0x2a   :  { %465 = vmatpush.bf16.msrb.mxu1 %v1049_v60  ;;  %427 = vmatpush.bf16.msra.mxu3 %v1051_v61 }
  0x2d   :  { %659 = vmatpush.bf16.msrb.mxu2 %v1060_v1  ;;  %v1096_v1 = vld [vmem:[#allocation10 + $0x1] ss:$0 sm:$0xff] }
  0x2e   :  { %466 = vmatpush.bf16.msrb.mxu1 %v1048_v0  ;;  %704 = vmatpush.bf16.msrb.mxu3 %v1066_v2 }
  0x31   :  { %660 = vmatpush.bf16.msrb.mxu2 %v1059_v6  ;;  %v1095_v6 = vld [vmem:[#allocation10 + $0x9] ss:$0 sm:$0xff] }
  0x32   :  { %467 = vmatpush.bf16.msrb.mxu1 %v1047_v5  ;;  %705 = vmatpush.bf16.msrb.mxu3 %v1065_v7 }
  0x36   :  { %706 = vmatpush.bf16.msrb.mxu3 %v1064_v9 }
  0x9d   :  { %v153_v12 = vpop.f32.mrf.mxu0 }
  0x9e   :  { %v154_v13 = vadd.f32 %v1088_v11, %v153_v12 }
  0xa0   :  { %v161_v14 = vsel %vm160_vm2, %v154_v13, 0.0 }
  0xa1   :  { %162 = vadd.xlane.f32.xlu2 %v161_v14 }
  0xa2   :  { %v260_v15 = vpop.f32.mrf.mxu1 }
  0xa3   :  { %v261_v25 = vadd.f32 %v1089_v20, %v260_v15 }
  0xa5   :  { %v155_v17 = vpop.f32.mrf.mxu0  ;;  %v267_v27 = vsel %vm266_vm3, %v261_v25, 0.0 }
  0xa6   :  { %v156_v18 = vadd.f32 %v1088_v11, %v155_v17  ;;  %v1063_v11 = vld [vmem:[%s1550_s5 + $0x40] sm:$0xff] }
  0xa7   :  { %v336_v19 = vpop.f32.mrf.mxu2  ;;  %707 = vmatpush.bf16.msrb.mxu3 %v1063_v11 }
  0xa8   :  { %v337_v21 = vadd.f32 %v1090_v16, %v336_v19  ;;  %v164_v22 = vsel %vm160_vm2, %v156_v18, 0.0 }
  0xa9   :  { %165 = vadd.xlane.f32.xlu2 %v164_v22 }
  0xaa   :  { %v342_v23 = vsel %vm266_vm3, %v337_v21, 0.0  ;;  %v262_v24 = vpop.f32.mrf.mxu1 }
  0xab   :  { %343 = vadd.xlane.f32.xlu0 %v342_v23 }
  0xaf   :  { %v338_v26 = vpop.f32.mrf.mxu2 }
  0xb3   :  { %268 = vadd.xlane.f32.xlu0 %v267_v27 }
 0x114   :  { %v163_v35 = vpop.xlane.xlu2 %162 }
 0x115   :  { %v174_v36 = vmul.f32 %v1404_v34, %v163_v35 }
 0x117   :  { %v1407_v37 = vsub.f32 %v154_v13, %v174_v36 }
 0x119   :  { %v178_v38 = vmul.f32 %v1407_v37, %v1407_v37 }
 0x11b   :  { %v180_v39 = vsel %vm160_vm2, %v178_v38, 0.0  ;;  %v1094_v38 = vld [vmem:[#allocation10 + $0x5] ss:$0 sm:$0xff] }
 0x11c   :  { %181 = vadd.xlane.f32.xlu0 %v180_v39  ;;  %v166_v44 = vpop.xlane.xlu2 %165 }
 0x11d   :  { %v175_v48 = vmul.f32 %v1404_v34, %v166_v44 }
 0x11e   :  { %v344_v40 = vpop.xlane.xlu0 %343 }
 0x11f   :  { %v345_v41 = vmul.f32 %v344_v40, %v1404_v34  ;;  %v1424_v51 = vsub.f32 %v156_v18, %v175_v48 }
 0x121   :  { %v1413_v42 = vsub.f32 %v337_v21, %v345_v41  ;;  %v179_v53 = vmul.f32 %v1424_v51, %v1424_v51  ;;  %v1092_v21 = vld [vmem:[#allocation10 + $0x7] ss:$0 sm:$0xff] }
 0x123   :  { %v347_v43 = vmul.f32 %v1413_v42, %v1413_v42  ;;  %v183_v54 = vsel %vm160_vm2, %v179_v53, 0.0 }
 0x125   :  { %v348_v45 = vsel %vm266_vm3, %v347_v43, 0.0 }
 0x126   :  { %349 = vadd.xlane.f32.xlu1 %v348_v45  ;;  %v269_v46 = vpop.xlane.xlu0 %268 }
 0x127   :  { %v270_v47 = vmul.f32 %v269_v46, %v1404_v34 }
 0x129   :  { %v1420_v49 = vsub.f32 %v261_v25, %v270_v47  ;;  %v1093_v25 = vld [vmem:[#allocation10 + $0x8] ss:$0 sm:$0xff] }
 0x12b   :  { %v272_v50 = vmul.f32 %v1420_v49, %v1420_v49 }
 0x12d   :  { %v273_v52 = vsel %vm266_vm3, %v272_v50, 0.0 }
 0x12e   :  { %274 = vadd.xlane.f32.xlu1 %v273_v52 }
 0x136   :  { %184 = vadd.xlane.f32.xlu1 %v183_v54 }
 0x18f   :  { %v182_v43 = vpop.xlane.xlu0 %181 }
 0x190   :  { %v186_v45 = vmul.f32 %v182_v43, %v1404_v34 }
 0x192   :  { %v188_v47 = vadd.f32 1e-05, %v186_v45 }
 0x194   :  { %vm196_vm11 = vweird.f32 %v188_v47 }
 0x199   :  { %v350_v63 = vpop.xlane.xlu1 %349 }
 0x19a   :  { %v351_v3 = vmul.f32 %v350_v63, %v1404_v34 }
 0x19c   :  { %v352_v4 = vadd.f32 1e-05, %v351_v3 }
 0x19e   :  { %1106 = vrsqrt.f32 %v352_v4  ;;  %vm359_vm6 = vweird.f32 %v352_v4 }
 0x1a1   :  { %v275_v8 = vpop.xlane.xlu1 %274 }
 0x1a2   :  { %v276_v10 = vmul.f32 %v275_v8, %v1404_v34 }
 0x1a4   :  { %v1107_v12 = vpop.eup %1106  ;;  %v277_v13 = vadd.f32 1e-05, %v276_v10 }
 0x1a5   :  { %v354_v14 = vmul.f32 %v1107_v12, %v352_v4  ;;  %vm360_vm5 = vweird.f32 %v1107_v12  ;;  %v1097_v4 = vld [vmem:[#allocation10 + $0x2] ss:$0 sm:$0xff] }
 0x1a6   :  { %1108 = vrsqrt.f32 %v277_v13  ;;  %vm361_vm7 = vmor %vm359_vm6, %vm360_vm5  ;;  %vm284_vm9 = vweird.f32 %v277_v13 }
 0x1a7   :  { %v355_v15 = vmul.f32 %v1107_v12, %v354_v14  ;;  %1110 = vrsqrt.f32 %v188_v47 }
 0x1a9   :  { %v356_v16 = vmul.f32 0.5, %v355_v15  ;;  %v185_v44 = vpop.xlane.xlu1 %184 }
 0x1aa   :  { %v187_v46 = vmul.f32 %v185_v44, %v1404_v34  ;;  %v1058_v44 = vld [vmem:[%s1550_s5 + $0x18] sm:$0xff] }
 0x1ab   :  { %v357_v17 = vsub.f32 1.5, %v356_v16  ;;  %607 = vmatpush.bf16.msra.mxu1 %v1058_v44  ;;  %v1069_v44 = vld [vmem:[%s1551_s6 + $0x10] sm:$0xff] }
 0x1ac   :  { %v1109_v18 = vpop.eup %1108  ;;  %v189_v48 = vadd.f32 1e-05, %v187_v46  ;;  %v1057_v46 = vld [vmem:[%s1550_s5 + $0x10] sm:$0xff] }
 0x1ad   :  { %v358_v19 = vmul.f32 %v1107_v12, %v357_v17  ;;  %v279_v20 = vmul.f32 %v1109_v18, %v277_v13  ;;  %vm285_vm8 = vweird.f32 %v1109_v18 }
 0x1ae   :  { %vm286_vm10 = vmor %vm284_vm9, %vm285_vm8  ;;  %1112 = vrsqrt.f32 %v189_v48  ;;  %vm206_vm15 = vweird.f32 %v189_v48 }
 0x1af   :  { %v362_v22 = vsel %vm361_vm7, %v1107_v12, %v358_v19  ;;  %v280_v23 = vmul.f32 %v1109_v18, %v279_v20  ;;  %608 = vmatpush.bf16.msra.mxu1 %v1057_v46  ;;  %v1067_v46 = vld [vmem:[%s1551_s6] sm:$0xff] }
 0x1b0   :  { %v363_v24 = vmul.f32 %v362_v22, %v1413_v42 }
 0x1b1   :  { %v281_v26 = vmul.f32 0.5, %v280_v23 }
 0x1b2   :  { %v365_v27 = vmul.f32 %v1092_v21, %v363_v24 }
 0x1b3   :  { %v282_v28 = vsub.f32 1.5, %v281_v26 }
 0x1b4   :  { %v367_v29 = vadd.f32 %v1093_v25, %v365_v27 }
 0x1b5   :  { %v283_v30 = vmul.f32 %v1109_v18, %v282_v28 }
 0x1b6   :  { %v368_v32 = vmax.f32 %v367_v29, 0.0 }
 0x1b7   :  { %v287_v33 = vsel %vm286_vm10, %v1109_v18, %v283_v30  ;;  %vm573_vm10 = vcmask 1041409  }
 0x1b8   :  { %v288_v35 = vmul.f32 %v287_v33, %v1420_v49  ;;  %v369_v36 = vpack.c.bf16 %v368_v32, %v368_v32  ;;  %827 = vst.msk [vmem:[#allocation12 + $0x2] sm:$0x3] %vm266_vm3, %v368_v32  ;;  %v1111_v49 = vpop.eup %1110 }
 0x1b9   :  { %v1113_v50 = vpop.eup %1112  ;;  %v191_v52 = vmul.f32 %v1111_v49, %v188_v47  ;;  %vm197_vm12 = vweird.f32 %v1111_v49 }
 0x1ba   :  { %v290_v39 = vmul.f32 %v1091_v31, %v288_v35  ;;  %921 = vmatmul.msk.bf16.vlgmr.msra.gmra.mxu3 %vm160_vm2, %v369_v36  ;;  %v201_v53 = vmul.f32 %v1113_v50, %v189_v48  ;;  %vm198_vm13 = vmor %vm196_vm11, %vm197_vm12  ;;  %vm207_vm14 = vweird.f32 %v1113_v50 }
 0x1bb   :  { %v192_v54 = vmul.f32 %v1111_v49, %v191_v52  ;;  %vm208_vm0 = vmor %vm206_vm15, %vm207_vm14 }
 0x1bc   :  { %v292_v40 = vadd.f32 %v1094_v38, %v290_v39  ;;  %v202_v55 = vmul.f32 %v1113_v50, %v201_v53  ;;  %v1055_v53 = vld [vmem:[%s1550_s5] sm:$0xff] }
 0x1bd   :  { %v193_v56 = vmul.f32 0.5, %v192_v54  ;;  %v1310_v54 = vmov 8.0  }
 0x1be   :  { %v1460_v41 = vmax.f32 %v292_v40, 0.0  ;;  %v203_v57 = vmul.f32 0.5, %v202_v55 }
 0x1bf   :  { %v194_v58 = vsub.f32 1.5, %v193_v56 }
 0x1c0   :  { %v294_v42 = vpack.c.bf16 %v1460_v41, %v1460_v41  ;;  %v204_v59 = vsub.f32 1.5, %v203_v57 }
 0x1c1   :  { %v195_v60 = vmul.f32 %v1111_v49, %v194_v58 }
 0x1c2   :  { %938 = vmatmul.msk.bf16.vlgmr.msrb.gmra.mxu1 %vm160_vm2, %v294_v42  ;;  %980 = vmatmul.msk.bf16.vlgmr.msrb.gmra.mxu2 %vm160_vm2, %v294_v42  ;;  %v205_v61 = vmul.f32 %v1113_v50, %v204_v59 }
 0x1c3   :  { %v199_v62 = vsel %vm198_vm13, %v1111_v49, %v195_v60  ;;  %vm825_vm13 = vcmask 1041920  }
 0x1c4   :  { %v209_v63 = vsel %vm208_vm0, %v1113_v50, %v205_v61  ;;  %v210_v0 = vmul.f32 %v199_v62, %v1407_v37  ;;  %v1098_v62 = vld [vmem:[#allocation10 + $0xa] ss:$0 sm:$0xff] }
 0x1c5   :  { %v211_v2 = vmul.f32 %v209_v63, %v1424_v51  ;;  %v1074_v63 = vld [vmem:[%s1551_s6 + $0x38] sm:$0xff] }
 0x1c6   :  { %v213_v3 = vmul.f32 %v1096_v1, %v210_v0  ;;  %781 = vmatpush.bf16.msrb.mxu0 %v1074_v63 }
 0x1c7   :  { %v214_v7 = vmul.f32 %v1096_v1, %v211_v2  ;;  %v1099_v2 = vld [vmem:[#allocation10 + $0xb] ss:$0 sm:$0xff] }
 0x1c8   :  { %v216_v10 = vadd.f32 %v1097_v4, %v213_v3 }
 0x1c9   :  { %v217_v12 = vadd.f32 %v1097_v4, %v214_v7 }
 0x1ca   :  { %1005 = vmatmul.msk.bf16.vlgmr.msrb.gmra.mxu3 %vm160_vm2, %v369_v36  ;;  %v218_v14 = vmax.f32 %v216_v10, 0.0 }
 0x1cb   :  { %v219_v18 = vmax.f32 %v217_v12, 0.0  ;;  %v1072_v12 = vld [vmem:[%s1551_s6 + $0x28] sm:$0xff] }
 0x23d   :  { %v429_v5 = vpop.f32.mrf.mxu3 }
 0x23f   :  { %v469_v8 = vpop.f32.mrf.mxu1 }
 0x240   :  { %v470_v9 = vadd.f32 %v469_v8, %v429_v5  ;;  %v1073_v5 = vld [vmem:[%s1551_s6 + $0x30] sm:$0xff] }
 0x241   :  { %782 = vmatpush.bf16.msrb.mxu0 %v1073_v5 }
 0x242   :  { %v474_v11 = vadd.f32 %v1095_v6, %v470_v9 }
 0x244   :  { %v476_v13 = vrot.slane %v474_v11, 1  ;;  %v477_v15 = vperm.slane %v474_v11, 0 }
 0x245   :  { %v431_v16 = vpop.f32.mrf.mxu3  ;;  %v1471_v17 = vpop.f32.mrf.mxu2  ;;  %783 = vmatpush.bf16.msrb.mxu0 %v1072_v12 }
 0x246   :  { %v481_v37 = vadd.f32 %v477_v15, %v218_v14  ;;  %v478_v19 = vperm.slane %v476_v13, 0 }
 0x247   :  { %v471_v51 = vpop.f32.mrf.mxu1 }
 0x248   :  { %v483_v20 = vsel %vm160_vm2, %v481_v37, 0.0  ;;  %v482_v21 = vadd.f32 %v478_v19, %v219_v18  ;;  %v1071_v18 = vld [vmem:[%s1551_s6 + $0x20] sm:$0xff] }
 0x249   :  { %484 = vadd.xlane.f32.xlu2 %v483_v20  ;;  %784 = vmatpush.bf16.msrb.mxu0 %v1071_v18 }
 0x24a   :  { %v486_v22 = vsel %vm160_vm2, %v482_v21, 0.0 }
 0x24b   :  { %487 = vadd.xlane.f32.xlu0 %v486_v22 }
 0x24d   :  { %v664_v23 = vpop.f32.mrf.mxu2  ;;  %v1475_v24 = vpop.f32.mrf.mxu3 }
 0x24e   :  { %v1070_v23 = vld [vmem:[%s1551_s6 + $0x18] sm:$0xff] }
 0x24f   :  { %785 = vmatpush.bf16.msrb.mxu0 %v1070_v23 }
 0x253   :  { %786 = vmatpush.bf16.msrb.mxu0 %v1069_v44 }
 0x255   :  { %v711_v25 = vpop.f32.mrf.mxu3 }
 0x2bc   :  { %v485_v26 = vpop.xlane.xlu2 %484 }
 0x2bd   :  { %v489_v27 = vmul.f32 %v485_v26, %v1404_v34 }
 0x2be   :  { %v488_v28 = vpop.xlane.xlu0 %487 }
 0x2bf   :  { %v491_v29 = vsub.f32 %v481_v37, %v489_v27  ;;  %v490_v30 = vmul.f32 %v488_v28, %v1404_v34 }
 0x2c1   :  { %v492_v31 = vsub.f32 %v482_v21, %v490_v30  ;;  %v493_v32 = vmul.f32 %v491_v29, %v491_v29 }
 0x2c3   :  { %v495_v33 = vsel %vm160_vm2, %v493_v32, 0.0  ;;  %v494_v35 = vmul.f32 %v492_v31, %v492_v31 }
 0x2c4   :  { %496 = vadd.xlane.f32.xlu1 %v495_v33 }
 0x2c5   :  { %v498_v36 = vsel %vm160_vm2, %v494_v35, 0.0 }
 0x2c6   :  { %499 = vadd.xlane.f32.xlu2 %v498_v36 }
 0x2de   :  { %822 = vrot.lane.b32.xlu2 %v1460_v41, %s1301_s21  ;;  %v1056_v41 = vld [vmem:[%s1550_s5 + $0x8] sm:$0xff] }
 0x2df   :  { %609 = vmatpush.bf16.msra.mxu1 %v1056_v41  ;;  %v1100_v41 = vld [vmem:[%s1553_s8] ss:$0 sm:$0xff] }
 0x2e3   :  { %610 = vmatpush.bf16.msra.mxu1 %v1055_v53 }
 0x337   :  { %v497_v38 = vpop.xlane.xlu1 %496 }
 0x338   :  { %v501_v39 = vmul.f32 %v497_v38, %v1404_v34 }
 0x339   :  { %v500_v40 = vpop.xlane.xlu2 %499 }
 0x33a   :  { %v503_v42 = vadd.f32 1e-05, %v501_v39  ;;  %v502_v43 = vmul.f32 %v500_v40, %v1404_v34 }
 0x33c   :  { %1114 = vrsqrt.f32 %v503_v42  ;;  %v504_v45 = vadd.f32 1e-05, %v502_v43  ;;  %vm511_vm4 = vweird.f32 %v503_v42 }
 0x33e   :  { %1116 = vrsqrt.f32 %v504_v45  ;;  %vm521_vm7 = vweird.f32 %v504_v45 }
 0x33f   :  { %1118 = vrcp.f32 %v1310_v54 }
 0x342   :  { %v1115_v47 = vpop.eup %1114 }
 0x343   :  { %v506_v48 = vmul.f32 %v1115_v47, %v503_v42  ;;  %vm512_vm1 = vweird.f32 %v1115_v47 }
 0x344   :  { %v1117_v49 = vpop.eup %1116  ;;  %vm513_vm6 = vmor %vm511_vm4, %vm512_vm1 }
 0x345   :  { %v507_v50 = vmul.f32 %v1115_v47, %v506_v48  ;;  %v516_v52 = vmul.f32 %v1117_v49, %v504_v45  ;;  %v1119_v59 = vpop.eup %1118  ;;  %vm522_vm5 = vweird.f32 %v1117_v49  ;;  %v1068_v45 = vld [vmem:[%s1551_s6 + $0x8] sm:$0xff]  ;;  %s1311_s6 = smov [#allocation11]  }
 0x346   :  { %vm523_vm8 = vmor %vm521_vm7, %vm522_vm5  ;;  %v550_v4 = vmul.f32 8.0, %v1119_v59  ;;  %vm554_vm9 = vweird.f32 %v1119_v59  ;;  %787 = vmatpush.bf16.msrb.mxu0 %v1068_v45  ;;  %s832_s8 = sshll.u32 %s1311_s6, 4  ;;  %s833_s8 = int_to_ptr.vmem [resolvable:$true] %s832_s8 }
 0x347   :  { %v508_v55 = vmul.f32 0.5, %v507_v50  ;;  %v517_v56 = vmul.f32 %v1117_v49, %v516_v52 }
 0x348   :  { %v551_v11 = vsub.f32 1.0, %v550_v4 }
 0x349   :  { %v509_v57 = vsub.f32 1.5, %v508_v55  ;;  %v518_v58 = vmul.f32 0.5, %v517_v56  ;;  %v1101_v55 = vld [vmem:[#allocation10 + $0xc] ss:$0 sm:$0xff] }
 0x34a   :  { %v552_v37 = vmul.f32 %v1119_v59, %v551_v11  ;;  %788 = vmatpush.bf16.msrb.mxu0 %v1067_v46 }
 0x34b   :  { %v510_v60 = vmul.f32 %v1115_v47, %v509_v57  ;;  %v519_v61 = vsub.f32 1.5, %v518_v58 }
 0x34c   :  { %v553_v22 = vadd.f32 %v1119_v59, %v552_v37 }
 0x34d   :  { %v514_v0 = vsel %vm513_vm6, %v1115_v47, %v510_v60  ;;  %v520_v1 = vmul.f32 %v1117_v49, %v519_v61 }
 0x34e   :  { %v525_v3 = vmul.f32 %v514_v0, %v491_v29  ;;  %v555_v29 = vsel %vm554_vm9, %v1119_v59, %v553_v22 }
 0x34f   :  { %v524_v6 = vsel %vm523_vm8, %v1117_v49, %v520_v1 }
 0x350   :  { %v528_v7 = vmul.f32 %v1098_v62, %v525_v3  ;;  %v526_v8 = vmul.f32 %v524_v6, %v492_v31 }
 0x352   :  { %v531_v9 = vadd.f32 %v1099_v2, %v528_v7  ;;  %v529_v10 = vmul.f32 %v1098_v62, %v526_v8  ;;  %v1102_v8 = vld [vmem:[#allocation10 + $0xd] ss:$0 sm:$0xff] }
 0x354   :  { %v535_v13 = vsel %vm160_vm2, %v531_v9, 0.0  ;;  %533 = vst.msk [vmem:[#allocation11] sm:$0xff] %vm160_vm2, %v531_v9  ;;  %v532_v14 = vadd.f32 %v1099_v2, %v529_v10  ;;  %v1103_v10 = vld [vmem:[#allocation10 + $0xe] ss:$0 sm:$0xff] }
 0x355   :  { %v536_v15 = vrot.slane %v535_v13, 4 }
 0x356   :  { %v542_v16 = vsel %vm160_vm2, %v532_v14, 0.0  ;;  %534 = vst.msk [vmem:[#allocation11 + $0x8] sm:$0xff] %vm160_vm2, %v532_v14 }
 0x357   :  { %v537_v19 = vadd.f32 %v536_v15, %v535_v13  ;;  %v543_v51 = vrot.slane %v542_v16, 4  ;;  %840 = dma.vmem_to_hbm [thread:$0]  %s833_s8, 256, %s835_s7, [#allocation4], %s1307_s16, %s1307_s16, %s1308_s17   ;;  %v823_v13 = vpop.permute.xlu2 %822 }
 0x358   :  { %s846_s16 = sshll.u32 %s1312_s9, 4  ;;  %s847_s16 = int_to_ptr.vmem [resolvable:$true] %s846_s16 }
 0x359   :  { %v538_v20 = vrot.slane %v537_v19, 2  ;;  %v544_v21 = vadd.f32 %v543_v51, %v542_v16 }
 0x35b   :  { %v539_v25 = vadd.f32 %v538_v20, %v537_v19  ;;  %v545_v26 = vrot.slane %v544_v21, 2 }
 0x35d   :  { %v540_v27 = vrot.slane %v539_v25, 1  ;;  %v546_v28 = vadd.f32 %v545_v26, %v544_v21 }
 0x35f   :  { %v547_v30 = vrot.slane %v546_v28, 1  ;;  %v541_v31 = vadd.f32 %v540_v27, %v539_v25 }
 0x361   :  { %v548_v32 = vadd.f32 %v547_v30, %v546_v28  ;;  %v556_v33 = vmul.f32 %v555_v29, %v541_v31 }
 0x363   :  { %v557_v35 = vmul.f32 %v555_v29, %v548_v32  ;;  %v558_v36 = vpack.c.bf16 %v556_v33, %v556_v33 }
 0x365   :  { %v559_v38 = vpack.c.bf16 %v557_v35, %v557_v35  ;;  %v571_v39 = vunpack.c.l.b16 %v558_v36 }
 0x367   :  { %v572_v40 = vunpack.c.l.b16 %v559_v38 }
 0x369   :  { %v574_v42 = vsel %vm573_vm10, %v572_v40, %v571_v39 }
 0x36a   :  { %v575_v43 = vpack.c.b16 %v574_v42, %v574_v42 }
 0x36c   :  { %955 = vmatmul.msk.bf16.vlgmr.msra.gmra.mxu1 %vm160_vm2, %v575_v43 }
 0x3e9   :  { %v612_v47 = vpop.f32.mrf.mxu1 }
 0x3ea   :  { %v619_v48 = vadd.f32 %v1100_v41, %v612_v47 }
 0x3ec   :  { %v666_v49 = vadd.f32 %v1471_v17, %v619_v48 }
 0x3ee   :  { %v713_v50 = vadd.f32 %v1475_v24, %v666_v49 }
 0x3f0   :  { %v714_v52 = vmax.f32 %v713_v50, 0.0 }
 0x3f1   :  { %v614_v53 = vpop.f32.mrf.mxu1 }
 0x3f2   :  { %v715_v54 = vpack.c.bf16 %v714_v52, %v714_v52 }
 0x3f4   :  { %789 = vmatmul.bf16.vlgmr.msrb.gmra.mxu0 %v715_v54 }
 0x471   :  { %v790_v56 = vpop.f32.mrf.mxu0 }
 0x472   :  { %v791_v57 = vadd.f32 %v1101_v55, %v790_v56 }
 0x474   :  { %v794_v58 = vsel %vm266_vm3, %v791_v57, 0.0 }
 0x475   :  { %795 = vadd.xlane.f32.xlu0 %v794_v58 }
 0x479   :  { %v792_v59 = vpop.f32.mrf.mxu0 }
 0x4e8   :  { %v796_v60 = vpop.xlane.xlu0 %795 }
 0x4e9   :  { %v797_v61 = vmul.f32 %v796_v60, %v1404_v34 }
 0x4eb   :  { %v798_v62 = vsub.f32 %v791_v57, %v797_v61 }
 0x4ed   :  { %v799_v63 = vmul.f32 %v798_v62, %v798_v62 }
 0x4ef   :  { %v800_v17 = vsel %vm266_vm3, %v799_v63, 0.0 }
 0x4f0   :  { %801 = vadd.xlane.f32.xlu1 %v800_v17 }
 0x563   :  { %v802_v24 = vpop.xlane.xlu1 %801 }
 0x564   :  { %v803_v0 = vmul.f32 %v802_v24, %v1404_v34 }
 0x566   :  { %v804_v1 = vadd.f32 1e-05, %v803_v0 }
 0x568   :  { %1120 = vrsqrt.f32 %v804_v1  ;;  %vm811_vm11 = vweird.f32 %v804_v1 }
 0x56e   :  { %v1121_v2 = vpop.eup %1120 }
 0x56f   :  { %v806_v3 = vmul.f32 %v1121_v2, %v804_v1  ;;  %vm812_vm2 = vweird.f32 %v1121_v2 }
 0x570   :  { %vm813_vm12 = vmor %vm811_vm11, %vm812_vm2 }
 0x571   :  { %v807_v4 = vmul.f32 %v1121_v2, %v806_v3 }
 0x573   :  { %v808_v5 = vmul.f32 0.5, %v807_v4 }
 0x575   :  { %v809_v6 = vsub.f32 1.5, %v808_v5 }
 0x577   :  { %v810_v7 = vmul.f32 %v1121_v2, %v809_v6 }
 0x579   :  { %v814_v9 = vsel %vm813_vm12, %v1121_v2, %v810_v7 }
 0x57a   :  { %v815_v11 = vmul.f32 %v814_v9, %v798_v62 }
 0x57c   :  { %v817_v12 = vmul.f32 %v1102_v8, %v815_v11 }
 0x57e   :  { %v819_v34 = vadd.f32 %v1103_v10, %v817_v12 }
 0x580   :  { %820 = vst.msk [vmem:[#allocation12] sm:$0x3] %vm266_vm3, %v819_v34 }
 0x581   :  { %826 = vst.msk [vmem:[#allocation12] sm:$0x3] %vm825_vm13, %v823_v13 }
 0x582   :  { %851 = dma.vmem_to_hbm [thread:$0]  %s847_s16, 64, %s849_s18, [#allocation13]  }
 0x583   :  { %1296 = dma.done.wait [#allocation4], 256  }
 0x584   :  { %1297 = vsyncadd [#allocation4], 4294967040 }
 0x585   :  { %1298 = dma.done.wait [#allocation13], 64  }
 0x586   :  { %1299 = vsyncadd [#allocation13], 4294967232 }
 0x587   :  { %860 = vsyncpa [#allocation3], 1 }
 0x588   :  { %861 = vsyncpa [#allocation6], 1 }
 0x589   :  { %862 = vsyncpa [#allocation9], 1 }
 0x58a   :  { %863 = vsyncpa [#allocation4], 1 }
 0x58b   :  { %864 = vsyncpa [#allocation13], 1 }

</bundles_post_ra>
